<compile_context>
chip_gen: v7x
topology: tpu7x:2x2x1
jax: 0.10.0
libtpu: 0.0.40
codegen_flags: <defaults>
</compile_context>

<pallas_src>
import jax
import jax.numpy as jnp
from jax.experimental import pallas as pl
from jax.experimental.pallas import tpu as pltpu


def _reorder_kernel(perm_ref, x_ref, o_ref):
    # The gather itself is realized by the input BlockSpec's index_map (which
    # picks source channel perm[c]); the body is a plain lane-dense tile copy.
    o_ref[...] = x_ref[...]


def _pick_batch_block(n, per_batch_bytes, target_bytes):
    """Largest divisor of n whose per-step block stays under the VMEM target."""
    best = 1
    for d in range(1, n + 1):
        if n % d == 0 and d * per_batch_bytes <= target_bytes:
            best = d
    return best


def _reorder_pallas(x, perm):
    N, C, H, W = x.shape
    itemsize = jnp.dtype(x.dtype).itemsize

    # Lane-dense layout: fold H*W so the trailing (lane) dim is a multiple of
    # 128 when possible. Last two block dims always equal the full array dims,
    # so the (8, 128) BlockSpec constraint is satisfied and the reshape is a
    # free view (H, W are contiguous in NCHW).
    hw = H * W
    if hw % 128 == 0:
        S, L = hw // 128, 128
    else:
        # TODO(synk): factor H*W into a 128-multiple lane dim when possible.
        S, L = 1, hw
    x4 = x.reshape(N, C, S, L)

    # VMEM footprint of one single-channel batch slab, padded to (8, 128) tiling.
    padded = (-(-S // 8) * 8) * (-(-L // 128) * 128) * itemsize
    # Aim for >=256 KiB..4 MiB DMAs (v7x roofline) while keeping
    # 2x in + 2x out double-buffering comfortably under v7x's scoped VMEM.
    bn = _pick_batch_block(N, padded, target_bytes=4 << 20)
    block_bytes = bn * padded
    vmem_limit = min(max(4 * block_bytes + (4 << 20), 16 << 20), 32 << 20)

    grid_spec = pltpu.PrefetchScalarGridSpec(
        num_scalar_prefetch=1,  # permutation table lands in SMEM
        grid=(N // bn, C),
        in_specs=[
            # Output channel c is fed from source channel perm[c].
            pl.BlockSpec((bn, 1, S, L), lambda nb, c, p: (nb, p[c], 0, 0)),
            # TODO(synk): for very small per-channel slabs, group G channels per
            # step with memory_space=pl.ANY + manual make_async_copy gathers.
        ],
        out_specs=pl.BlockSpec((bn, 1, S, L), lambda nb, c, p: (nb, c, 0, 0)),
    )

    y4 = pl.pallas_call(
        _reorder_kernel,
        out_shape=jax.ShapeDtypeStruct((N, C, S, L), x.dtype),
        grid_spec=grid_spec,
        compiler_params=pltpu.CompilerParams(
            # Every grid point writes a disjoint output block -> both axes are
            # safely "parallel" (lets v7x shard across its two TensorCores).
            dimension_semantics=("parallel", "parallel"),
            vmem_limit_bytes=vmem_limit,
        ),
    )(perm, x4)

    return y4.reshape(N, C, H, W)


# Below this payload the fixed pallas_call / per-step overhead dominates a tiny
# gather; let XLA's gather handle it.
_SMALL_BYTES = 1 << 20


def reorder_forward(x, logp, randperm, *, force_pallas=False):
    """Pallas equivalent of Reorder.forward: y = index_select(x, 1, randperm)."""
    perm = randperm.astype(jnp.int32)
    if (not force_pallas) and x.size * jnp.dtype(x.dtype).itemsize < _SMALL_BYTES:
        y = jnp.take(x, perm, axis=1)
    else:
        y = _reorder_pallas(x, perm)
    if logp is None:
        return y
    return y, logp


def reorder_inverse(y, logp, invperm, *, force_pallas=False):
    """Pallas equivalent of Reorder.inverse (same gather with inverse perm)."""
    return reorder_forward(y, logp, invperm, force_pallas=force_pallas)


if __name__ == "__main__":
    key = jax.random.PRNGKey(0)
    k_perm, k_x, k_lp = jax.random.split(key, 3)

    N, C, H, W = 2, 4, 16, 16

    # Deterministic permutation buffers (analogue of torch.randperm / argsort).
    randperm = jax.random.permutation(k_perm, C).astype(jnp.int32)
    invperm = jnp.argsort(randperm).astype(jnp.int32)

    x = jax.random.normal(k_x, (N, C, H, W), dtype=jnp.float32)
    logp = jax.random.normal(k_lp, (N,), dtype=jnp.float32)

    # Force the Pallas path even at this toy size so the kernel is exercised.
    y, logp_out = reorder_forward(x, logp, randperm, force_pallas=True)
    jax.block_until_ready(y)

    # Reference check against plain-JAX index_select semantics.
    y_ref = jnp.take(x, randperm, axis=1)
    assert jnp.array_equal(y, y_ref), "forward permutation mismatch"
    assert jnp.array_equal(logp_out, logp), "logp must pass through unchanged"

    # Round trip through inverse (also through the kernel).
    x_back, _ = reorder_inverse(y, logp, invperm, force_pallas=True)
    jax.block_until_ready(x_back)
    assert jnp.array_equal(x_back, x), "inverse does not invert forward"

    # The auto-dispatch (small-shape XLA gather) path must agree as well.
    y_small, _ = reorder_forward(x, logp, randperm)
    assert jnp.array_equal(y_small, y_ref), "small-shape fallback mismatch"

    print("KERNEL_OK")
</pallas_src>

<mosaic_0001>
module attributes {stable_mosaic.version = 11 : i64} {
  func.func @_reorder_kernel(%arg0: i32, %arg1: i32, %arg2: memref<4xi32, #tpu.memory_space<smem>>, %arg3: memref<2x1x2x128xf32, #tpu.memory_space<vmem>>, %arg4: memref<2x1x2x128xf32, #tpu.memory_space<vmem>>) attributes {dimension_semantics = [#tpu.dimension_semantics<parallel>, #tpu.dimension_semantics<parallel>], iteration_bounds = array<i64: 1, 4>, scalar_prefetch = 1 : i64, scratch_operands = 0 : i64, tpu.core_type = #tpu.core_type<tc>, window_params = [{transform_indices = @transform_0, window_bounds = array<i64: 2, 1, 2, 128>}, {transform_indices = @transform_1, window_bounds = array<i64: 2, 1, 2, 128>}]} {
    %c0 = arith.constant 0 : index
    %c0_0 = arith.constant 0 : index
    %c0_1 = arith.constant 0 : index
    %c0_2 = arith.constant 0 : index
    %0 = vector.load %arg3[%c0, %c0_0, %c0_1, %c0_2] : memref<2x1x2x128xf32, #tpu.memory_space<vmem>>, vector<2x1x2x128xf32>
    %c0_3 = arith.constant 0 : index
    %c0_4 = arith.constant 0 : index
    %c0_5 = arith.constant 0 : index
    %c0_6 = arith.constant 0 : index
    %1 = vector.load %arg4[%c0_3, %c0_4, %c0_5, %c0_6] : memref<2x1x2x128xf32, #tpu.memory_space<vmem>>, vector<2x1x2x128xf32>
    tpu.vector_store %arg4[%c0_3, %c0_4, %c0_5, %c0_6], %0 {strides = array<i32>} : memref<2x1x2x128xf32, #tpu.memory_space<vmem>>, vector<2x1x2x128xf32>,
    return
  }
  func.func @transform_0(%arg0: i32, %arg1: i32, %arg2: memref<4xi32, #tpu.memory_space<smem>>) -> (i32, i32, i32, i32) {
    %0 = arith.index_cast %arg1 : i32 to index
    %1 = memref.load %arg2[%0] : memref<4xi32, #tpu.memory_space<smem>>
    %c0_i32 = arith.constant 0 : i32
    %c0_i32_0 = arith.constant 0 : i32
    %c0_i32_1 = arith.constant 0 : i32
    return %arg0, %1, %c0_i32, %c0_i32_0 : i32, i32, i32, i32
  }
  func.func @transform_1(%arg0: i32, %arg1: i32, %arg2: memref<4xi32, #tpu.memory_space<smem>>) -> (i32, i32, i32, i32) {
    %c0_i32 = arith.constant 0 : i32
    %c0_i32_0 = arith.constant 0 : i32
    %c0_i32_1 = arith.constant 0 : i32
    return %arg0, %arg1, %c0_i32, %c0_i32_0 : i32, i32, i32, i32
  }
}

</mosaic_0001>

<bundles_post_ra>
// kernel: tpu_custom_call.1
= control target key start
LH: loop header
LB: loop body
LE: loop exit
PB: predicated region body
PF: predicated region fallthrough
CT: control target
= control target key end

     0   :  { %s774_s0 = inlined_call_operand.hbm [shape: s32[4], index: 0, kind: input, shape index: {}]   ;;  %s775_s1 = inlined_call_operand.hbm [shape: f32[2,4,2,128], index: 1, kind: input, shape index: {}]   ;;  %s776_s2 = inlined_call_operand.hbm [shape: f32[2,4,2,128], index: 2, kind: output, shape index: {}]  }
   0x1   :  { %s379_s11 = scalar_lea.hbm %s774_s0, 16 }
   0x2   :  { %p380_p0 = scmp.ne.s32.totalorder %s774_s0, %s379_s11  ;;  %p383_p1 = scmp.lt.u32.totalorder %s379_s11, %s774_s0 }
   0x4   :  { %p385_p2 = pnand %p383_p1, %p380_p0 }
   0x6   :  { %388 = shalt.err (!%p385_p2)  }
   0x7   :  { %s529_s16 = smov [#allocation3]  }
   0x8   :  { %8 = dma.hbm_to_smem %s774_s0, 16, %s529_s16, [#allocation2] }
   0x9   :  { %483 = dma.done.wait [#allocation2], 16 }
   0xa   :  { %484 = vsyncadd [#allocation2], 4294967280 }
   0xb   :  { %10 = sfence }
   0xc   :  { %11 = vsyncpa [#allocation5], 0 }
   0xd   :  { %13 = vsyncpa [#allocation5 + $0x1], 0 }
   0xe   :  { %14 = vsyncpa [#allocation6], 0 }
   0xf   :  { %16 = vsyncpa [#allocation6 + $0x1], 0  ;;  %s565_s19 = smov 0   ;;  %s567_s20 = smov 0  }
  0x10   :  { %s569_s21 = smov 0   ;;  %s571_s22 = smov 0  }
  0x11   :  { %s573_s23 = smov 0   ;;  %s575_s24 = smov 0  }
  0x12   :  { %s577_s0 = smov 0   ;;  %s579_s25 = smov 0  }
  0x13   :  { %s581_s26 = smov 0  }
  0x14 LB: > { %s269_s27 = sadd.s32 4294967295, %s527_s26   ;;  %s270_s28 = sadd.s32 4294967294, %s527_s26   ;;  %s527_s26 = sphi %s581_s26, %s22_s26   ;;  %s523_s25 = sphi %s579_s25, %s795_s25   ;;  %s519_s0 = sphi %s577_s0, %s794_s0   ;;  %s515_s24 = sphi %s575_s24, %s793_s24   ;;  %s511_s23 = sphi %s573_s23, %s792_s23   ;;  %s507_s22 = sphi %s571_s22, %s791_s22   ;;  %s503_s21 = sphi %s569_s21, %s790_s21   ;;  %s499_s20 = sphi %s567_s20, %s789_s20   ;;  %s495_s19 = sphi %s565_s19, %s788_s19  }
  0x15   : > { %s31_s29 = sadd.s32 1, %s523_s25  ;;  %s38_s30 = sld [smem:[#allocation3 + %s523_s25]] }
  0x16   : > { %p32_p3 = scmp.ge.s32.totalorder %s31_s29, 4  ;;  %s45_s3 = sadd.s32 1, %s515_s24 }
  0x17   : > { %p52_p4 = scmp.ne.s32.totalorder %s515_s24, %s511_s23  ;;  %p53_p5 = scmp.eq.s32.totalorder %s527_s26, 0 }
  0x18   : > { %s797_s29 = smov (%p32_p3, %s31_s29), 0  ;;  %p58_p7 = scmp.ne.s32.totalorder %s511_s23, %s507_s22 }
  0x19   : > { %p618_p6 = por %p53_p5, %p52_p4  ;;  %s39_s5 = sld [smem:[#allocation3 + %s797_s29]] }
  0x1a   : > { %p59_p8 = scmp.eq.s32.totalorder %s269_s27, 0  ;;  %s69_s6 = ssub.s32 %s523_s25, %s797_s29 }
  0x1b   : > { %s73_s7 = sadd.s32 1, %s503_s21  ;;  %p71_p10 = scmp.eq.s32.totalorder %s69_s6, 0 }
  0x1c   : > { %p627_p9 = por %p59_p8, %p58_p7  ;;  %p83_p11 = scmp.ne.s32.totalorder %s503_s21, %s499_s20 }
  0x1d   : > { %p84_p12 = scmp.eq.s32.totalorder %s269_s27, 3  ;;  %p89_p0 = scmp.ne.s32.totalorder %s499_s20, %s495_s19 }
  0x1e   : > { %s780_s8 = scalar_select %p627_p9, 1, 0 }
  0x1f   : > { %s634_s9 = scalar_select %p71_p10, %s503_s21, %s73_s7  }
  0x20   : > { %p636_p13 = por %p84_p12, %p83_p11  ;;  %s41_s11 = ssub.s32 %s38_s30, %s39_s5 }
  0x21   : > { %p90_p1 = scmp.eq.s32.totalorder %s270_s28, 3  ;;  %p43_p2 = scmp.eq.s32.totalorder %s41_s11, 0 }
  0x22   : > { %s781_s10 = scalar_select %p636_p13, 1, 0 }
  0x23   : > { %p642_p3 = por %p90_p1, %p89_p0  ;;  %p298_p4 = scmp.lt.s32.totalorder %s527_s26, 4 }
  0x24   : > { %s648_s13 = scalar_select %p43_p2, %s515_s24, %s45_s3  }
  0x25   : > { %s782_s12 = scalar_select %p642_p3, 1, 0 }
  0x26   : > { %s110_s14 = sand.u32 1, %s515_s24   ;;  %p653_p5 = pnand %p298_p4, %p618_p6 }
  0x27   : > { %s273_s16 = sshll.u32 %s110_s14, 2  ;;  %p275_p7 = scmp.ge.s32.totalorder %s527_s26, 1 }
  0x28   : > { %s282_s17 = scalar_select %p618_p6, [#allocation3], [#allocation8] }
  0x29   : > { %s283_s18 = scalar_select %p618_p6, %s523_s25, 0 }
  0x2a   : > { %s799_s17 = smov (!%p298_p4, %s282_s17), [#allocation9]  ;;  %s114_s27 = scalar_lea.vmem [#allocation4], %s273_s16 }
  0x2b   : > { %s801_s18 = smov (!%p298_p4, %s283_s18), 0  ;;  %s124_s28 = sshll.u32 %s114_s27, 4  ;;  %s664_s28 = int_to_ptr.vmem [resolvable:$true] %s124_s28 }
  0x2c   : > { %s115_s22 = sld [smem:[%s799_s17 + %s801_s18]]  ;;  %p132_p8 = scmp.lt.s32.totalorder %s527_s26, 5 }
  0x2d   : > { %s675_s7 = scalar_lea.sflag [#allocation5], %s110_s14  ;;  %p391_p11 = pneg %p653_p5 }
  0x2e   : > { %p666_p10 = pnand %p275_p7, %p132_p8  ;;  %s394_s18 = scalar_lea.hbm %s775_s1, 256 }
  0x32   : > { %s274_s3 = sshll.u32 %s115_s22, 5 }
  0x33   : > { %s673_s4 = scalar_lea.hbm %s775_s1, %s274_s3 }
  0x34   : > { %s389_s11 = scalar_lea.hbm %s673_s4, 64  ;;  %p395_p1 = scmp.lt.u32.totalorder %s673_s4, %s775_s1 }
  0x35   : > { %p390_p6 = scmp.ne.s32.totalorder %s673_s4, %s389_s11  ;;  %p396_p2 = scmp.lt.u32.totalorder %s394_s18, %s389_s11 }
  0x36   : > { %p398_p7 = scmp.lt.u32.totalorder %s389_s11, %s673_s4 }
  0x37   : > { %p392_p12 = pnand %p391_p11, %p390_p6  ;;  %p397_p4 = por %p396_p2, %p395_p1 }
  0x39   : > { %p393_p0 = pneg %p392_p12  ;;  %p399_p8 = por %p398_p7, %p397_p4 }
  0x3b   : > { %p400_p3 = pnand %p399_p8, %p393_p0 }
  0x3d   : > { %403 = shalt.err (!%p400_p3)
}
  0x3e   : > { %s404_s14 = scalar_lea.vmem %s664_s28, 64  ;;  %s530_s3 = smov [#allocation4]  }
  0x3f   : > { %p405_p6 = scmp.ne.s32.totalorder %s664_s28, %s404_s14  ;;  %s409_s5 = sshll.u32 %s530_s3, 4  ;;  %s410_s5 = int_to_ptr.vmem [resolvable:$false] %s409_s5 }
  0x40   : > { %s411_s6 = scalar_lea.vmem %s410_s5, 128  ;;  %p412_p9 = scmp.lt.s32.totalorder %s664_s28, %s410_s5 }
  0x41   : > { %p407_p12 = pnand %p405_p6, %p391_p11  ;;  %p413_p1 = scmp.lt.s32.totalorder %s411_s6, %s404_s14 }
  0x43   : > { %p408_p13 = pneg %p407_p12  ;;  %p414_p2 = por %p413_p1, %p412_p9 }
  0x45   : > { %p415_p4 = pnand %p414_p2, %p408_p13 }
  0x47   : > { %418 = shalt.err (!%p415_p4)
}
  0x48   : > { %s531_s11 = smov 128   ;;  %s532_s16 = smov 32  }
  0x49   : > { %s533_s17 = smov 2   ;;  %136 = sbr.rel (%p666_p10) target bundleno = 109 (0x6d), region = 24 }
  0x4a   : > { %293 = dma.hbm_to_vmem [thread:$0]  (!%p653_p5), %s673_s4, 64, %s664_s28, %s675_s7, %s531_s11, %s532_s16, %s533_s17  }
  0x4b   : > { %s138_s18 = sand.u32 (!%p666_p10), 1, %s511_s23   ;;  %p785_p9 = scmp.ne.s32.totalorder (!%p666_p10), %s780_s8, 0 }
  0x4c   : > { %s276_s22 = sshll.u32 (!%p666_p10), %s138_s18, 2  ;;  %s139_s27 = scalar_lea.sflag (!%p666_p10), [#allocation5], %s138_s18 }
  0x4d   : > { %s142_s14 = scalar_lea.vmem (!%p666_p10), [#allocation4], %s276_s22 }
  0x50   : > { %486 = dma.done.wait (%p785_p9), %s139_s27, 64  }
  0x51   : > { %488 = vsyncadd (%p785_p9), %s139_s27, 4294967232  ;;  %s158_s3 = sand.u32 1, %s499_s20   ;;  %s279_s28 = sshll.u32 %s519_s0, 5  ;;  %v164_v0 = vld [vmem:[%s142_s14] sm:$0xf]  }
  0x52   : > { %s277_s15 = sshll.u32 %s158_s3, 2  ;;  %s715_s6 = scalar_lea.hbm %s776_s2, %s279_s28 }
  0x53   : > { %s160_s4 = scalar_lea.vmem [#allocation7], %s277_s15  ;;  %s719_s8 = scalar_lea.sflag [#allocation6], %s158_s3 }
  0x54   : > { %s184_s30 = sshll.u32 %s160_s4, 4  ;;  %166 = vst [vmem:[%s160_s4] sm:$0xf] %v164_v0   ;;  %p786_p3 = scmp.ne.s32.totalorder %s781_s10, 0  ;;  %s717_s30 = int_to_ptr.vmem [resolvable:$true] %s184_s30 }
  0x55   : > { %s419_s11 = scalar_lea.vmem %s717_s30, 64  ;;  %s534_s0 = smov [#allocation7]  }
  0x56   : > { %p420_p13 = scmp.ne.s32.totalorder %s717_s30, %s419_s11  ;;  %s423_s16 = sshll.u32 %s534_s0, 4  ;;  %s424_s16 = int_to_ptr.vmem [resolvable:$false] %s423_s16 }
  0x57   : > { %s425_s17 = scalar_lea.vmem %s424_s16, 128  ;;  %p426_p11 = scmp.lt.s32.totalorder %s717_s30, %s424_s16 }
  0x58   : > { %p421_p5 = pnand %p420_p13, %p786_p3  ;;  %p427_p0 = scmp.lt.s32.totalorder %s425_s17, %s419_s11 }
  0x5a   : > { %p422_p10 = pneg %p421_p5  ;;  %p428_p7 = por %p427_p0, %p426_p11 }
  0x5c   : > { %p429_p8 = pnand %p428_p7, %p422_p10 }
  0x5e   : > { %432 = shalt.err (!%p429_p8)
}
  0x5f   : > { %s433_s18 = scalar_lea.hbm %s715_s6, 64  ;;  %s437_s14 = scalar_lea.hbm %s776_s2, 256 }
  0x60   : > { %p434_p6 = scmp.ne.s32.totalorder %s715_s6, %s433_s18  ;;  %p438_p2 = scmp.lt.u32.totalorder %s715_s6, %s776_s2 }
  0x61   : > { %p439_p4 = scmp.lt.u32.totalorder %s437_s14, %s433_s18  ;;  %p441_p13 = scmp.lt.u32.totalorder %s433_s18, %s715_s6 }
  0x62   : > { %p435_p12 = pnand %p434_p6, %p786_p3 }
  0x63   : > { %p440_p9 = por %p439_p4, %p438_p2 }
  0x64   : > { %p436_p1 = pneg %p435_p12 }
  0x65   : > { %p442_p5 = por %p441_p13, %p440_p9 }
  0x67   : > { %p443_p10 = pnand %p442_p5, %p436_p1 }
  0x69   : > { %446 = shalt.err (!%p443_p10)
}
  0x6a   : > { %s535_s28 = smov 32   ;;  %s536_s4 = smov 128  }
  0x6b   : > { %s537_s7 = smov 2  }
  0x6c   : > { %286 = dma.vmem_to_hbm [thread:$0]  (%p786_p3), %s717_s30, 64, %s715_s6, %s719_s8, %s535_s28, %s536_s4, %s537_s7  }
  0x6d PF: > { %p299_p11 = scmp.ge.s32.totalorder %s527_s26, 2  ;;  %s199_s5 = sand.u32 1, %s495_s19  }
  0x6e   : > { %p787_p0 = scmp.ne.s32.totalorder %s782_s12, 0  ;;  %s200_s11 = scalar_lea.sflag [#allocation6], %s199_s5 }
  0x70   : > { %p295_p7 = pnand %p299_p11, %p787_p0 }
  0x72   : > { %490 = dma.done.wait (!%p295_p7), %s200_s11, 64  }
  0x73   : > { %492 = vsyncadd (!%p295_p7), %s200_s11, 4294967232  ;;  %s22_s26 = sadd.s32 1, %s527_s26   ;;  %s788_s19 = smov %s499_s20 }
  0x74   : > { %p19_p8 = scmp.ge.s32.totalorder %s22_s26, 6   ;;  %s789_s20 = smov %s503_s21 }
  0x75   : > { %s790_s21 = smov %s634_s9  ;;  %s791_s22 = smov %s511_s23 }
  0x76   : > { %s792_s23 = smov %s515_s24  ;;  %s793_s24 = smov %s648_s13 }
  0x77   : > { %s794_s0 = smov %s523_s25  ;;  %s795_s25 = smov %s797_s29 }
  0x78   :  { %21 = sbr.rel (!%p19_p8) target bundleno = 20 (0x14), region = 69 }
  0x7f   :  { %205 = vsyncpa [#allocation5], 1 }
  0x80   :  { %207 = vsyncpa [#allocation5 + $0x1], 1 }
  0x81   :  { %208 = vsyncpa [#allocation6], 1 }
  0x82   :  { %210 = vsyncpa [#allocation6 + $0x1], 1 }

</bundles_post_ra>
